<compile_context>
chip_gen: v7x
topology: tpu7x:2x2x1
jax: 0.10.0
libtpu: 0.0.40
codegen_flags: <defaults>
</compile_context>

<pallas_src>
import functools

import jax
import jax.numpy as jnp
from jax.experimental import pallas as pl
from jax.experimental.pallas import tpu as pltpu

_CLAMP_LO = -1.0e10
_CLAMP_HI = 1.0e10
_CLAMP_SLOPE = 1.0e-4
_EPS = 1.0e-5

# per-buffer tile floor: big enough to amortize the ~0.35us/grid-step overhead
_MIN_TILE_BYTES = 4 << 20


def _round_up(v, m):
    return ((v + m - 1) // m) * m


def _cdiv(a, b):
    return -(-a // b)


def _vmem_capacity_bytes():
    try:
        return int(pltpu.get_tpu_info().vmem_capacity_bytes)
    except Exception:
        return 64 << 20  # conservative: assume v7x (smallest VMEM per core)


def _leaky_clamp_f32(x):
    c = jnp.clip(x, _CLAMP_LO, _CLAMP_HI)
    return c + _CLAMP_SLOPE * (x - c)


# --------------------------------------------------------------------------
# Main path: one grid axis over instance rows, full H*W on the lane axis.
# --------------------------------------------------------------------------
def _cin_row_kernel(x_ref, o_ref, *, inv_hw):
    # x_ref / o_ref: (row_tile, hw) block in the native dtype.  The block's
    # last dim equals the full spatial extent, so reductions only see real
    # data; a partial last row block holds garbage rows whose outputs are
    # masked on writeback (rows are independent, so nothing propagates).
    y = _leaky_clamp_f32(x_ref[...].astype(jnp.float32))
    mean = jnp.sum(y, axis=-1, keepdims=True) * inv_hw
    centered = y - mean
    # two-pass tile-local variance (no E[y^2]-mean^2 cancellation)
    var = jnp.sum(centered * centered, axis=-1, keepdims=True) * inv_hw
    inv_std = jax.lax.rsqrt(var + _EPS)
    o_ref[...] = (centered * inv_std).astype(o_ref.dtype)


# --------------------------------------------------------------------------
# Large-H*W fallback: grid = (rows, pass, hw_blocks).
#   pass 0: accumulate sum / sum-of-squares per row into VMEM scratch,
#           finalize mean / inv_std on the last hw block
#   pass 1: re-read x, recompute leaky_clamp, normalize and write out
# Costs ~2x input reads but fits VMEM for arbitrarily large H*W (v7x-safe).
# --------------------------------------------------------------------------
def _cin_hw_split_kernel(x_ref, o_ref, sum_ref, ssq_ref, *, inv_hw, hw, hw_tile):
    p = pl.program_id(1)
    j = pl.program_id(2)
    nj = pl.num_programs(2)

    y = _leaky_clamp_f32(x_ref[...].astype(jnp.float32))

    @pl.when((p == 0) & (j == 0))
    def _():
        sum_ref[...] = jnp.zeros_like(sum_ref)
        ssq_ref[...] = jnp.zeros_like(ssq_ref)

    @pl.when(p == 0)
    def _():
        if hw % hw_tile != 0:
            # mask garbage lanes of the partial last hw block out of the sums
            lane = jax.lax.broadcasted_iota(jnp.int32, y.shape, 1)
            ym = jnp.where(lane < (hw - j * hw_tile), y, 0.0)
        else:
            ym = y
        sum_ref[...] += jnp.sum(ym, axis=-1, keepdims=True)
        ssq_ref[...] += jnp.sum(ym * ym, axis=-1, keepdims=True)

        @pl.when(j == nj - 1)
        def _():
            mean = sum_ref[...] * inv_hw
            # single-pass variance only on this fallback path
            var = jnp.maximum(ssq_ref[...] * inv_hw - mean * mean, 0.0)
            sum_ref[...] = mean
            ssq_ref[...] = jax.lax.rsqrt(var + _EPS)

    @pl.when(p == 1)
    def _():
        o_ref[...] = ((y - sum_ref[...]) * ssq_ref[...]).astype(o_ref.dtype)


def _cin_hw_split(x2d, nc, hw, itemsize, sub, budget, vmem_cap):
    per_elem = 4 * itemsize + 8          # 2x in + 2x out buffers + ~2 f32 temps
    row_tile = min(sub, nc)
    hw_tile = max(128, (budget // (max(row_tile, 1) * per_elem)) // 128 * 128)
    hw_tile = min(hw_tile, _round_up(hw, 128))
    row_steps = _cdiv(nc, row_tile)
    hw_steps = _cdiv(hw, hw_tile)

    tile_native = row_tile * hw_tile * itemsize
    tile_f32 = row_tile * hw_tile * 4
    vmem_limit = int(min(max(4 * tile_native + 2 * tile_f32 + (4 << 20),
                             16 << 20), vmem_cap))

    kernel = functools.partial(_cin_hw_split_kernel,
                               inv_hw=1.0 / hw, hw=hw, hw_tile=hw_tile)
    return pl.pallas_call(
        kernel,
        out_shape=jax.ShapeDtypeStruct((nc, hw), x2d.dtype),
        grid_spec=pltpu.PrefetchScalarGridSpec(
            num_scalar_prefetch=0,
            grid=(row_steps, 2, hw_steps),
            in_specs=[pl.BlockSpec((row_tile, hw_tile), lambda i, p, j: (i, j))],
            # During the stats pass (p=0) park the output window on block
            # (i, 0): the block index doesn't change, so no garbage HBM
            # writes are issued; pass 1 writes the real blocks.
            out_specs=pl.BlockSpec((row_tile, hw_tile),
                                   lambda i, p, j: (i, j * p)),
            scratch_shapes=[pltpu.VMEM((row_tile, 1), jnp.float32),
                            pltpu.VMEM((row_tile, 1), jnp.float32)],
        ),
        compiler_params=pltpu.CompilerParams(
            dimension_semantics=("parallel", "arbitrary", "arbitrary"),
            vmem_limit_bytes=vmem_limit,
        ),
    )(x2d)


# --------------------------------------------------------------------------
# Public wrapper
# --------------------------------------------------------------------------
def clamped_instance_norm_2d(x, *, vmem_budget_bytes=None):
    """x: (N, C, H, W) -> (N, C, H, W), InstanceNorm2d(leaky_clamp(x))."""
    N, C, H, W = x.shape
    nc = N * C
    hw = H * W

    itemsize = jnp.dtype(x.dtype).itemsize
    sub = 8 * max(1, 4 // itemsize)          # rows per packed sublane group

    hw_lanes = _round_up(hw, 128)            # lane-padded VMEM footprint / row
    # live VMEM per row: 2x double-buffered in + 2x out (native dtype)
    # + ~2 full f32 temporaries (leaky-clamped y, centered y)
    per_row_vmem = hw_lanes * (4 * itemsize + 8)
    bytes_per_row = hw_lanes * itemsize

    capacity = _vmem_capacity_bytes()
    if vmem_budget_bytes is None:
        # v5e/v6e have 128 MiB VMEM -> generous budget; v7x has 64 MiB
        vmem_budget_bytes = (64 << 20) if capacity >= (96 << 20) else (40 << 20)
    vmem_cap = (100 << 20) if capacity >= (96 << 20) else (48 << 20)

    x2d = x.reshape(nc, hw)

    if per_row_vmem * min(sub, nc) > vmem_budget_bytes:
        # huge H*W: even one sublane group of full rows blows VMEM
        out2d = _cin_hw_split(x2d, nc, hw, itemsize, sub,
                              vmem_budget_bytes, vmem_cap)
        return out2d.reshape(N, C, H, W)

    max_rows = max(sub, (vmem_budget_bytes // per_row_vmem) // sub * sub)
    rows_min = _round_up(max(sub, _cdiv(_MIN_TILE_BYTES, bytes_per_row)), sub)
    row_tile = min(max_rows, rows_min)

    # v7x megacore: prefer >= 2 grid steps when each half stays >= ~2 MiB
    half_rows = _round_up(_cdiv(nc, 2), sub)
    if (row_tile >= nc and half_rows < nc
            and half_rows * bytes_per_row >= (2 << 20)):
        row_tile = half_rows

    if row_tile >= nc:
        row_tile = nc        # single block covering the full row extent
    else:
        # keep the step count even for v7x's 2 TensorCores on the parallel axis
        steps = _cdiv(nc, row_tile)
        if steps > 1 and steps % 2 == 1:
            alt = _round_up(_cdiv(nc, steps + 1), sub)
            if alt >= sub and _cdiv(nc, alt) % 2 == 0:
                row_tile = alt

    grid = (_cdiv(nc, row_tile),)
    tile_native = row_tile * hw_lanes * itemsize
    tile_f32 = row_tile * hw_lanes * 4
    vmem_limit = int(min(max(4 * tile_native + 2 * tile_f32 + (4 << 20),
                             16 << 20), vmem_cap))

    out2d = pl.pallas_call(
        functools.partial(_cin_row_kernel, inv_hw=1.0 / hw),
        out_shape=jax.ShapeDtypeStruct((nc, hw), x.dtype),
        grid_spec=pltpu.PrefetchScalarGridSpec(
            num_scalar_prefetch=0,
            grid=grid,
            in_specs=[pl.BlockSpec((row_tile, hw), lambda i: (i, 0))],
            out_specs=pl.BlockSpec((row_tile, hw), lambda i: (i, 0)),
        ),
        compiler_params=pltpu.CompilerParams(
            dimension_semantics=("parallel",),
            vmem_limit_bytes=vmem_limit,
        ),
    )(x2d)
    return out2d.reshape(N, C, H, W)


def _reference(x):
    """Pure-JAX reference for correctness check."""
    xf = x.astype(jnp.float32)
    y = _leaky_clamp_f32(xf)
    mean = jnp.mean(y, axis=(2, 3), keepdims=True)
    var = jnp.mean((y - mean) ** 2, axis=(2, 3), keepdims=True)
    return ((y - mean) * jax.lax.rsqrt(var + _EPS)).astype(x.dtype)


if __name__ == "__main__":
    key = jax.random.PRNGKey(0)

    # main case: NCHW input, lane-dense spatial size
    x = jax.random.normal(key, (2, 4, 16, 16), dtype=jnp.float32) * 3.0
    out = jax.block_until_ready(clamped_instance_norm_2d(x))
    ref = _reference(x)
    assert out.shape == x.shape and out.dtype == x.dtype
    assert jnp.allclose(out, ref, atol=3e-5, rtol=1e-4), (
        f"max err {jnp.max(jnp.abs(out - ref))}"
    )

    # unpadded path: H*W not a multiple of 128, N*C not a multiple of 8
    x2 = jax.random.normal(jax.random.PRNGKey(1), (2, 3, 7, 7), jnp.float32) * 2.0
    out2 = jax.block_until_ready(clamped_instance_norm_2d(x2))
    ref2 = _reference(x2)
    assert jnp.allclose(out2, ref2, atol=3e-5, rtol=1e-4), (
        f"max err (unpadded) {jnp.max(jnp.abs(out2 - ref2))}"
    )

    # large-H*W fallback path (forced via a tiny VMEM budget): hw split onto a
    # second grid axis with a masked partial last hw block
    x3 = jax.random.normal(jax.random.PRNGKey(2), (2, 4, 16, 25), jnp.float32) * 2.0
    out3 = jax.block_until_ready(
        clamped_instance_norm_2d(x3, vmem_budget_bytes=64 * 1024))
    ref3 = _reference(x3)
    assert jnp.allclose(out3, ref3, atol=1e-4, rtol=1e-4), (
        f"max err (hw-split) {jnp.max(jnp.abs(out3 - ref3))}"
    )

    # native bf16 I/O path
    x4 = (jax.random.normal(jax.random.PRNGKey(3), (2, 4, 16, 16), jnp.float32)
          * 3.0).astype(jnp.bfloat16)
    out4 = jax.block_until_ready(clamped_instance_norm_2d(x4))
    ref4 = _reference(x4)
    assert out4.dtype == jnp.bfloat16
    assert jnp.allclose(out4.astype(jnp.float32), ref4.astype(jnp.float32),
                        atol=5e-2, rtol=5e-2), (
        f"max err (bf16) {jnp.max(jnp.abs(out4.astype(jnp.float32) - ref4.astype(jnp.float32)))}"
    )

    print("KERNEL_OK")
</pallas_src>

<mosaic_0001>
module attributes {stable_mosaic.version = 11 : i64} {
  func.func @_cin_row_kernel(%arg0: i32, %arg1: memref<8x256xf32, #tpu.memory_space<vmem>>, %arg2: memref<8x256xf32, #tpu.memory_space<vmem>>) attributes {dimension_semantics = [#tpu.dimension_semantics<parallel>], iteration_bounds = array<i64: 1>, scalar_prefetch = 0 : i64, scratch_operands = 0 : i64, tpu.core_type = #tpu.core_type<tc>, window_params = [{transform_indices = @transform_0, window_bounds = array<i64: 8, 256>}, {transform_indices = @transform_1, window_bounds = array<i64: 8, 256>}]} {
    %c0 = arith.constant 0 : index
    %c0_0 = arith.constant 0 : index
    %0 = vector.load %arg1[%c0, %c0_0] : memref<8x256xf32, #tpu.memory_space<vmem>>, vector<8x256xf32>
    %cst = arith.constant -1.000000e+10 : f32
    %cst_1 = arith.constant 1.000000e+10 : f32
    %1 = vector.broadcast %cst : f32 to vector<8x256xf32>
    %2 = arith.maximumf %1, %0 : vector<8x256xf32>
    %3 = vector.broadcast %cst_1 : f32 to vector<8x256xf32>
    %4 = arith.minimumf %3, %2 : vector<8x256xf32>
    %5 = arith.subf %0, %4 : vector<8x256xf32>
    %cst_2 = arith.constant 9.99999974E-5 : f32
    %6 = vector.broadcast %cst_2 : f32 to vector<8x256xf32>
    %7 = arith.mulf %6, %5 : vector<8x256xf32>
    %8 = arith.addf %4, %7 : vector<8x256xf32>
    %cst_3 = arith.constant dense<0.000000e+00> : vector<8xf32>
    %9 = vector.multi_reduction <add>, %8, %cst_3 [1] : vector<8x256xf32> to vector<8xf32>
    %10 = vector.shape_cast %9 : vector<8xf32> to vector<8x1xf32>
    %cst_4 = arith.constant 3.906250e-03 : f32
    %11 = vector.broadcast %cst_4 : f32 to vector<8x1xf32>
    %12 = arith.mulf %10, %11 : vector<8x1xf32>
    %13 = vector.broadcast %12 : vector<8x1xf32> to vector<8x256xf32>
    %14 = arith.subf %8, %13 : vector<8x256xf32>
    %15 = arith.mulf %14, %14 : vector<8x256xf32>
    %cst_5 = arith.constant dense<0.000000e+00> : vector<8xf32>
    %16 = vector.multi_reduction <add>, %15, %cst_5 [1] : vector<8x256xf32> to vector<8xf32>
    %17 = vector.shape_cast %16 : vector<8xf32> to vector<8x1xf32>
    %cst_6 = arith.constant 3.906250e-03 : f32
    %18 = vector.broadcast %cst_6 : f32 to vector<8x1xf32>
    %19 = arith.mulf %17, %18 : vector<8x1xf32>
    %cst_7 = arith.constant 9.99999974E-6 : f32
    %20 = vector.broadcast %cst_7 : f32 to vector<8x1xf32>
    %21 = arith.addf %19, %20 : vector<8x1xf32>
    %22 = math.rsqrt %21 : vector<8x1xf32>
    %23 = vector.broadcast %22 : vector<8x1xf32> to vector<8x256xf32>
    %24 = arith.mulf %14, %23 : vector<8x256xf32>
    %c0_8 = arith.constant 0 : index
    %c0_9 = arith.constant 0 : index
    %25 = vector.load %arg2[%c0_8, %c0_9] : memref<8x256xf32, #tpu.memory_space<vmem>>, vector<8x256xf32>
    tpu.vector_store %arg2[%c0_8, %c0_9], %24 {strides = array<i32>} : memref<8x256xf32, #tpu.memory_space<vmem>>, vector<8x256xf32>,
    return
  }
  func.func @transform_0(%arg0: i32) -> (i32, i32) {
    %c0_i32 = arith.constant 0 : i32
    %c0_i32_0 = arith.constant 0 : i32
    return %arg0, %c0_i32 : i32, i32
  }
  func.func @transform_1(%arg0: i32) -> (i32, i32) {
    %c0_i32 = arith.constant 0 : i32
    %c0_i32_0 = arith.constant 0 : i32
    return %arg0, %c0_i32 : i32, i32
  }
}

</mosaic_0001>

<bundles_post_ra>
// kernel: tpu_custom_call.1
= control target key start
LH: loop header
LB: loop body
LE: loop exit
PB: predicated region body
PF: predicated region fallthrough
CT: control target
= control target key end

     0   :  { %6 = vsyncpa [#allocation3], 0  ;;  %s156_s0 = inlined_call_operand.hbm [shape: f32[8,256], index: 0, kind: input, shape index: {}]   ;;  %s157_s1 = inlined_call_operand.hbm [shape: f32[8,256], index: 1, kind: output, shape index: {}]  }
   0x1   :  { %7 = vsyncpa [#allocation4], 0  ;;  %s120_s6 = smov [#allocation2]   ;;  %s72_s10 = scalar_lea.hbm %s156_s0, 256 }
   0x2   :  { %s14_s7 = sshll.u32 %s120_s6, 4  ;;  %p73_p0 = scmp.ne.s32.totalorder %s156_s0, %s72_s10  ;;  %s15_s7 = int_to_ptr.vmem [resolvable:$true] %s14_s7 }
   0x3   :  { %p76_p1 = scmp.lt.u32.totalorder %s72_s10, %s156_s0 }
   0x5   :  { %p78_p2 = pnand %p76_p1, %p73_p0 }
   0x7   :  { %81 = shalt.err (!%p78_p2)
}
   0x8   :  { %s82_s15 = scalar_lea.vmem %s15_s7, 256  ;;  %p87_p4 = scmp.lt.s32.totalorder %s15_s7, %s15_s7 }
   0x9   :  { %p83_p3 = scmp.ne.s32.totalorder %s15_s7, %s82_s15  ;;  %p88_p5 = scmp.lt.s32.totalorder %s82_s15, %s82_s15 }
   0xb   :  { %p89_p6 = por %p88_p5, %p87_p4 }
   0xd   :  { %p90_p7 = pnand %p89_p6, %p83_p3 }
   0xf   :  { %93 = shalt.err (!%p90_p7)
}
  0x10   :  { %17 = dma.hbm_to_vmem [thread:$0]  %s156_s0, 256, %s15_s7, [#allocation3]  }
  0x11   :  { %116 = dma.done.wait [#allocation3], 256  }
  0x12   :  { %117 = vsyncadd [#allocation3], 4294967040  ;;  %v21_v0 = vld [vmem:[#allocation2] sm:$0xff]  ;;  %v22_v1 = vld [vmem:[#allocation2 + $0x8] sm:$0xff]  ;;  %s121_s0 = smov [#allocation5]  }
  0x13   :  { %v66_v2 = vclamps-f32 %v21_v0, 1e+10  ;;  %v67_v3 = vclamps-f32 %v22_v1, 1e+10  ;;  %s57_s18 = sshll.u32 %s121_s0, 4  ;;  %s58_s18 = int_to_ptr.vmem [resolvable:$true] %s57_s18 }
  0x14   :  { %s94_s19 = scalar_lea.vmem %s58_s18, 256  ;;  %p99_p9 = scmp.lt.s32.totalorder %s58_s18, %s58_s18 }
  0x15   :  { %v27_v4 = vsub.f32 %v21_v0, %v66_v2  ;;  %v28_v5 = vsub.f32 %v22_v1, %v67_v3  ;;  %p95_p8 = scmp.ne.s32.totalorder %s58_s18, %s94_s19  ;;  %p100_p10 = scmp.lt.s32.totalorder %s94_s19, %s94_s19 }
  0x17   :  { %v29_v6 = vmul.f32 0.0001, %v27_v4  ;;  %v30_v7 = vmul.f32 0.0001, %v28_v5  ;;  %p101_p11 = por %p100_p10, %p99_p9 }
  0x19   :  { %v31_v8 = vadd.f32 %v66_v2, %v29_v6  ;;  %v32_v9 = vadd.f32 %v67_v3, %v30_v7  ;;  %p102_p12 = pnand %p101_p11, %p95_p8 }
  0x1b   :  { %v33_v10 = vadd.f32 %v32_v9, %v31_v8 }
  0x1d   :  { %34 = vadd.xlane.f32.xlu0 %v33_v10 }
  0xaa   :  { %v35_v11 = vpop.xlane.xlu0 %34 }
  0xab   :  { %v36_v12 = vmul.f32 0.00390625, %v35_v11 }
  0xad   :  { %v37_v13 = vsub.f32 %v31_v8, %v36_v12  ;;  %v38_v14 = vsub.f32 %v32_v9, %v36_v12 }
  0xaf   :  { %v39_v15 = vmul.f32 %v37_v13, %v37_v13  ;;  %v40_v16 = vmul.f32 %v38_v14, %v38_v14 }
  0xb1   :  { %v41_v17 = vadd.f32 %v40_v16, %v39_v15 }
  0xb3   :  { %42 = vadd.xlane.f32.xlu0 %v41_v17 }
 0x140   :  { %v43_v18 = vpop.xlane.xlu0 %42 }
 0x141   :  { %v44_v19 = vmul.f32 0.00390625, %v43_v18 }
 0x143   :  { %v45_v20 = vadd.f32 1e-05, %v44_v19 }
 0x145   :  { %70 = vrsqrt.f32 %v45_v20 }
 0x14f   :  { %v71_v21 = vpop.eup %70 }
 0x150   :  { %v47_v22 = vmul.f32 %v71_v21, %v37_v13  ;;  %v48_v23 = vmul.f32 %v71_v21, %v38_v14 }
 0x152   :  { %49 = vst [vmem:[#allocation5] sm:$0xff] %v47_v22  ;;  %50 = vst [vmem:[#allocation5 + $0x8] sm:$0xff] %v48_v23 }
 0x153   :  { %105 = shalt.err (!%p102_p12)
}
 0x154   :  { %s106_s22 = scalar_lea.hbm %s157_s1, 256 }
 0x155   :  { %p107_p13 = scmp.ne.s32.totalorder %s157_s1, %s106_s22  ;;  %p110_p0 = scmp.lt.u32.totalorder %s106_s22, %s157_s1 }
 0x157   :  { %p112_p1 = pnand %p110_p0, %p107_p13 }
 0x159   :  { %115 = shalt.err (!%p112_p1)
}
 0x15a   :  { %60 = dma.vmem_to_hbm [thread:$0]  %s58_s18, 256, %s157_s1, [#allocation4]  }
 0x15b   :  { %118 = dma.done.wait [#allocation4], 256  }
 0x15c   :  { %119 = vsyncadd [#allocation4], 4294967040 }
 0x15d   :  { %64 = vsyncpa [#allocation3], 1 }
 0x15e   :  { %65 = vsyncpa [#allocation4], 1 }

</bundles_post_ra>
